<compile_context>
chip_gen: v6e
topology: v6e:2x2x1
jax: 0.10.0
libtpu: 0.0.40
codegen_flags: <defaults>
</compile_context>

<pallas_src>
import functools

import jax
import jax.numpy as jnp
from jax import lax
from jax.experimental import pallas as pl
from jax.experimental.pallas import tpu as pltpu


def _round_up(a, m):
    return (a + m - 1) // m * m


def _pick_tile(padded, candidates):
    for c in candidates:
        if padded % c == 0:
            return c
    return padded


def _module_fwd_kernel(x_ref, w_ref, b_ref, y_ref,
                       scores_ref, nll_ref,
                       acc_ref, m_ref, l_ref, sel_ref,
                       *, tm, tn, batch):
    i = pl.program_id(0)
    j = pl.program_id(1)
    k = pl.program_id(2)
    nj = pl.num_programs(1)
    nk = pl.num_programs(2)

    # ---- per-(i, j) matmul accumulator init ----
    @pl.when(k == 0)
    def _():
        acc_ref[...] = jnp.zeros((tm, tn), jnp.float32)

    # ---- per-i online-softmax state init ----
    @pl.when(jnp.logical_and(j == 0, k == 0))
    def _():
        m_ref[...] = jnp.full((tm, 1), -jnp.inf, jnp.float32)
        l_ref[...] = jnp.zeros((tm, 1), jnp.float32)
        sel_ref[...] = jnp.zeros((tm, 1), jnp.float32)

    # ---- K-tiled matmul on the MXU; bf16 operands, f32 accumulation ----
    acc_ref[...] += jnp.dot(x_ref[...], w_ref[...],
                            preferred_element_type=jnp.float32)

    # ---- once the (i, j) scores tile is complete ----
    @pl.when(k == nk - 1)
    def _():
        scores = acc_ref[...] + b_ref[...]                      # (tm, tn) f32
        scores_ref[...] = scores.astype(scores_ref.dtype)

        # online softmax statistics across class tiles j
        m_prev = m_ref[...]
        m_new = jnp.maximum(m_prev, jnp.max(scores, axis=-1, keepdims=True))
        alpha = jnp.exp(m_prev - m_new)
        l_ref[...] = alpha * l_ref[...] + jnp.sum(
            jnp.exp(scores - m_new), axis=-1, keepdims=True)
        m_ref[...] = m_new

        # raw score at the label (label falls in exactly one class tile)
        class_ids = j * tn + lax.broadcasted_iota(jnp.int32, (tm, tn), 1)
        y_col = y_ref[...][:, 0:1]                 # (tm, 1); all lanes identical
        onehot = (class_ids == y_col).astype(jnp.float32)
        sel_ref[...] += jnp.sum(onehot * scores, axis=-1, keepdims=True)

    # ---- finalize: per-batch-tile partial NLL sum after the last class tile ----
    @pl.when(jnp.logical_and(j == nj - 1, k == nk - 1))
    def _():
        lse = m_ref[...] + jnp.log(l_ref[...])                  # (tm, 1)
        nll = lse - sel_ref[...]                                # (tm, 1)
        row_ids = i * tm + lax.broadcasted_iota(jnp.int32, (tm, 1), 0)
        valid = (row_ids < batch).astype(jnp.float32)           # mask pad rows
        tile_sum = jnp.sum(nll * valid, axis=(0, 1), keepdims=True)   # (1, 1)
        r = lax.broadcasted_iota(jnp.int32, (8, 128), 0)
        c = lax.broadcasted_iota(jnp.int32, (8, 128), 1)
        nll_ref[...] = jnp.where(jnp.logical_and(r == 0, c == 0),
                                 tile_sum,
                                 jnp.zeros((8, 128), jnp.float32))


def module_forward(x, w, b, y):
    """Pallas forward: returns ModuleOutput-like dict {'loss', 'scores'}."""
    B, H = x.shape
    Hw, C = w.shape
    assert H == Hw
    y = jnp.asarray(y).reshape(B).astype(jnp.int32)

    out_dtype = x.dtype                      # scores dtype follows the input
    s_item = jnp.dtype(out_dtype).itemsize

    # ---- lane/sublane-dense padding (bf16 packs 16 rows per vreg) ----
    B_pad = _round_up(B, 16)
    H_pad = _round_up(H, 128)
    C_pad = _round_up(C, 128)

    # batch tile; keep nb >= 2 when possible so both v7x TensorCores get work
    TM = _pick_tile(B_pad, (512, 256, 128, 64, 32, 16))
    if B_pad // TM == 1 and TM >= 32:
        TM //= 2
    nb = B_pad // TM

    # class tile: prefer 512/256-aligned N (v6e/v7x MXU is 2x 256x256)
    TN = _pick_tile(C_pad, (512, 256, 128))
    # -1e9 padded-bias trick requires every class tile to hold >= 1 real class
    assert C_pad - C < TN, "class padding must be smaller than one class tile"

    def vmem_footprint(tk, tn):
        f = 2 * TM * tk * 2                  # x (bf16), double-buffered
        f += 2 * tk * tn * 2                 # w (bf16), double-buffered
        f += 2 * 1 * tn * 4                  # bias (f32)
        f += 2 * TM * 128 * 4                # labels (int32)
        f += 2 * TM * tn * s_item            # scores out
        f += 2 * 8 * 128 * 4                 # nll partial sums out
        f += TM * tn * 4 + 3 * TM * 4        # scratch (acc + m/l/sel)
        return f

    # K tile: keep the whole x row-panel resident per batch tile when it fits
    # (x then streams from HBM exactly once per batch tile); otherwise K-tile.
    VMEM_BUDGET = 20 * 2 ** 20
    tk_candidates = [H_pad] + [c for c in (2048, 1024, 512, 256, 128)
                               if c < H_pad and H_pad % c == 0]
    TK = tk_candidates[-1]
    for c in tk_candidates:
        if vmem_footprint(c, TN) <= VMEM_BUDGET:
            TK = c
            break
    nc, nk = C_pad // TN, H_pad // TK

    # ---- bf16 MXU operands; f32 bias (-1e9 in padded class columns) ----
    x_p = jnp.pad(x, ((0, B_pad - B), (0, H_pad - H))).astype(jnp.bfloat16)
    w_p = jnp.pad(w, ((0, H_pad - H), (0, C_pad - C))).astype(jnp.bfloat16)
    b_p = jnp.pad(b.reshape(1, C).astype(jnp.float32),
                  ((0, 0), (0, C_pad - C)), constant_values=-1e9)
    # lane-dense replicated labels; width fixed at 128 (independent of TN)
    y_p = jnp.pad(y, (0, B_pad - B))
    y_rep = jnp.broadcast_to(y_p[:, None], (B_pad, 128))

    kernel = functools.partial(_module_fwd_kernel, tm=TM, tn=TN, batch=B)

    grid_spec = pltpu.PrefetchScalarGridSpec(
        num_scalar_prefetch=0,
        grid=(nb, nc, nk),
        in_specs=[
            pl.BlockSpec((TM, TK), lambda i, j, k: (i, k)),     # x
            pl.BlockSpec((TK, TN), lambda i, j, k: (k, j)),     # w
            pl.BlockSpec((1, TN), lambda i, j, k: (0, j)),      # bias
            pl.BlockSpec((TM, 128), lambda i, j, k: (i, 0)),    # labels
        ],
        out_specs=[
            pl.BlockSpec((TM, TN), lambda i, j, k: (i, j)),     # scores
            pl.BlockSpec((8, 128), lambda i, j, k: (i, 0)),     # nll partial sums
        ],
        scratch_shapes=[
            pltpu.VMEM((TM, TN), jnp.float32),                  # matmul acc
            pltpu.VMEM((TM, 1), jnp.float32),                   # running max
            pltpu.VMEM((TM, 1), jnp.float32),                   # running sum
            pltpu.VMEM((TM, 1), jnp.float32),                   # label score
        ],
    )

    # HBM traffic including re-streams: x re-read per class tile only when
    # K-tiled; w re-read once per batch tile.
    x_bytes = (nc if nk > 1 else 1) * B_pad * H_pad * 2
    w_bytes = nb * H_pad * C_pad * 2
    misc_bytes = nb * nk * C_pad * 4 + B_pad * 128 * 4
    out_bytes = B_pad * C_pad * s_item + nb * 8 * 128 * 4
    cost = pl.CostEstimate(
        flops=2 * B_pad * H_pad * C_pad,
        transcendentals=B_pad * C_pad + 2 * B_pad,
        bytes_accessed=int(x_bytes + w_bytes + misc_bytes + out_bytes))

    vmem_limit = int(min(max(2 * vmem_footprint(TK, TN), 16 * 2 ** 20),
                         48 * 2 ** 20))

    scores_pad, nll_part = pl.pallas_call(
        kernel,
        out_shape=(
            jax.ShapeDtypeStruct((B_pad, C_pad), out_dtype),
            jax.ShapeDtypeStruct((nb * 8, 128), jnp.float32),
        ),
        grid_spec=grid_spec,
        compiler_params=pltpu.CompilerParams(
            dimension_semantics=("parallel", "arbitrary", "arbitrary"),
            vmem_limit_bytes=vmem_limit),
        cost_estimate=cost,
    )(x_p, w_p, b_p, y_rep)

    scores = scores_pad[:B, :C]
    loss = jnp.sum(nll_part) / jnp.float32(B)   # padded rows masked in-kernel
    return {"loss": loss, "scores": scores}
    # TODO(synk): freeze_pretrained/unfreeze_pretrained are training-time
    # parameter bookkeeping with no kernel-level equivalent.


if __name__ == "__main__":
    # deterministic small shapes implied by the forward contract
    B, H, C = 8, 32, 8
    key = jax.random.PRNGKey(0)
    kx, kw, kb, ky = jax.random.split(key, 4)

    x = jax.random.normal(kx, (B, H), dtype=jnp.float32)
    w = jax.random.normal(kw, (H, C), dtype=jnp.float32) * 0.05
    b = jax.random.normal(kb, (C,), dtype=jnp.float32) * 0.01
    y = jax.random.randint(ky, (B,), 0, C, dtype=jnp.int32)

    out = module_forward(x, w, b, y)
    jax.block_until_ready(out["scores"])
    jax.block_until_ready(out["loss"])

    # reference check in plain JAX (operands rounded to bf16 like the kernel)
    xb = x.astype(jnp.bfloat16).astype(jnp.float32)
    wb = w.astype(jnp.bfloat16).astype(jnp.float32)
    ref_scores = xb @ wb + b
    ref_logp = jax.nn.log_softmax(ref_scores, axis=-1)
    ref_loss = -jnp.mean(ref_logp[jnp.arange(B), y])
    assert jnp.allclose(out["scores"].astype(jnp.float32), ref_scores,
                        atol=1e-3, rtol=1e-3)
    assert jnp.allclose(out["loss"], ref_loss, atol=1e-3, rtol=1e-3)

    print("KERNEL_OK")
</pallas_src>

<mosaic_0001>
module attributes {stable_mosaic.version = 11 : i64} {
  func.func @_module_fwd_kernel(%arg0: i32, %arg1: i32, %arg2: i32, %arg3: memref<16x128xbf16, #tpu.memory_space<vmem>>, %arg4: memref<128x128xbf16, #tpu.memory_space<vmem>>, %arg5: memref<1x128xf32, #tpu.memory_space<vmem>>, %arg6: memref<16x128xi32, #tpu.memory_space<vmem>>, %arg7: memref<16x128xf32, #tpu.memory_space<vmem>>, %arg8: memref<8x128xf32, #tpu.memory_space<vmem>>, %arg9: memref<16x128xf32, #tpu.memory_space<vmem>>, %arg10: memref<16x1xf32, #tpu.memory_space<vmem>>, %arg11: memref<16x1xf32, #tpu.memory_space<vmem>>, %arg12: memref<16x1xf32, #tpu.memory_space<vmem>>) attributes {dimension_semantics = [#tpu.dimension_semantics<parallel>, #tpu.dimension_semantics<arbitrary>, #tpu.dimension_semantics<arbitrary>], iteration_bounds = array<i64: 1, 1, 1>, scalar_prefetch = 0 : i64, scratch_operands = 4 : i64, tpu.core_type = #tpu.core_type<tc>, window_params = [{transform_indices = @transform_0, window_bounds = array<i64: 16, 128>}, {transform_indices = @transform_1, window_bounds = array<i64: 128, 128>}, {transform_indices = @transform_2, window_bounds = array<i64: 1, 128>}, {transform_indices = @transform_3, window_bounds = array<i64: 16, 128>}, {transform_indices = @transform_4, window_bounds = array<i64: 16, 128>}, {transform_indices = @transform_5, window_bounds = array<i64: 8, 128>}]} {
    %c0_i32 = arith.constant 0 : i32
    %0 = arith.cmpi eq, %arg2, %c0_i32 : i32
    %1 = arith.extui %0 : i1 to i32
    %c0_i32_0 = arith.constant 0 : i32
    %2 = arith.cmpi ne, %1, %c0_i32_0 : i32
    scf.if %2 {
      %cst_16 = arith.constant 0.000000e+00 : f32
      %22 = vector.broadcast %cst_16 : f32 to vector<16x128xf32>
      %c0_17 = arith.constant 0 : index
      %c0_18 = arith.constant 0 : index
      %23 = vector.load %arg9[%c0_17, %c0_18] : memref<16x128xf32, #tpu.memory_space<vmem>>, vector<16x128xf32>
      tpu.vector_store %arg9[%c0_17, %c0_18], %22 {strides = array<i32>} : memref<16x128xf32, #tpu.memory_space<vmem>>, vector<16x128xf32>,
    } else {
    }
    %c0_i32_1 = arith.constant 0 : i32
    %3 = arith.cmpi eq, %arg1, %c0_i32_1 : i32
    %c0_i32_2 = arith.constant 0 : i32
    %4 = arith.cmpi eq, %arg2, %c0_i32_2 : i32
    %5 = arith.andi %3, %4 : i1
    %6 = arith.extui %5 : i1 to i32
    %c0_i32_3 = arith.constant 0 : i32
    %7 = arith.cmpi ne, %6, %c0_i32_3 : i32
    scf.if %7 {
      %cst_16 = arith.constant 0xFF800000 : f32
      %22 = vector.broadcast %cst_16 : f32 to vector<16x1xf32>
      %c0_17 = arith.constant 0 : index
      %c0_18 = arith.constant 0 : index
      %23 = vector.load %arg10[%c0_17, %c0_18] : memref<16x1xf32, #tpu.memory_space<vmem>>, vector<16x1xf32>
      tpu.vector_store %arg10[%c0_17, %c0_18], %22 {strides = array<i32>} : memref<16x1xf32, #tpu.memory_space<vmem>>, vector<16x1xf32>,
      %cst_19 = arith.constant 0.000000e+00 : f32
      %24 = vector.broadcast %cst_19 : f32 to vector<16x1xf32>
      %c0_20 = arith.constant 0 : index
      %c0_21 = arith.constant 0 : index
      %25 = vector.load %arg11[%c0_20, %c0_21] : memref<16x1xf32, #tpu.memory_space<vmem>>, vector<16x1xf32>
      tpu.vector_store %arg11[%c0_20, %c0_21], %24 {strides = array<i32>} : memref<16x1xf32, #tpu.memory_space<vmem>>, vector<16x1xf32>,
      %cst_22 = arith.constant 0.000000e+00 : f32
      %26 = vector.broadcast %cst_22 : f32 to vector<16x1xf32>
      %c0_23 = arith.constant 0 : index
      %c0_24 = arith.constant 0 : index
      %27 = vector.load %arg12[%c0_23, %c0_24] : memref<16x1xf32, #tpu.memory_space<vmem>>, vector<16x1xf32>
      tpu.vector_store %arg12[%c0_23, %c0_24], %26 {strides = array<i32>} : memref<16x1xf32, #tpu.memory_space<vmem>>, vector<16x1xf32>,
    } else {
    }
    %c0 = arith.constant 0 : index
    %c0_4 = arith.constant 0 : index
    %8 = vector.load %arg9[%c0, %c0_4] : memref<16x128xf32, #tpu.memory_space<vmem>>, vector<16x128xf32>
    %c0_5 = arith.constant 0 : index
    %c0_6 = arith.constant 0 : index
    %9 = vector.load %arg3[%c0_5, %c0_6] : memref<16x128xbf16, #tpu.memory_space<vmem>>, vector<16x128xbf16>
    %c0_7 = arith.constant 0 : index
    %c0_8 = arith.constant 0 : index
    %10 = vector.load %arg4[%c0_7, %c0_8] : memref<128x128xbf16, #tpu.memory_space<vmem>>, vector<128x128xbf16>
    %cst = arith.constant dense<0.000000e+00> : vector<16x128xf32>
    %11 = tpu.matmul %9, %10, %cst {dimension_numbers = #tpu.dot_dimension_numbers<[1], [0], [0], [1], [0, 0, 1, 1], [], []>} : vector<16x128xbf16>, vector<128x128xbf16>, vector<16x128xf32> -> vector<16x128xf32>
    %12 = arith.addf %8, %11 : vector<16x128xf32>
    %c0_9 = arith.constant 0 : index
    %c0_10 = arith.constant 0 : index
    %13 = vector.load %arg9[%c0_9, %c0_10] : memref<16x128xf32, #tpu.memory_space<vmem>>, vector<16x128xf32>
    tpu.vector_store %arg9[%c0_9, %c0_10], %12 {strides = array<i32>} : memref<16x128xf32, #tpu.memory_space<vmem>>, vector<16x128xf32>,
    %c0_i32_11 = arith.constant 0 : i32
    %14 = arith.cmpi eq, %arg2, %c0_i32_11 : i32
    %15 = arith.extui %14 : i1 to i32
    %c0_i32_12 = arith.constant 0 : i32
    %16 = arith.cmpi ne, %15, %c0_i32_12 : i32
    scf.if %16 {
      %c0_16 = arith.constant 0 : index
      %c0_17 = arith.constant 0 : index
      %22 = vector.load %arg9[%c0_16, %c0_17] : memref<16x128xf32, #tpu.memory_space<vmem>>, vector<16x128xf32>
      %c0_18 = arith.constant 0 : index
      %c0_19 = arith.constant 0 : index
      %23 = vector.load %arg5[%c0_18, %c0_19] : memref<1x128xf32, #tpu.memory_space<vmem>>, vector<1x128xf32>
      %24 = vector.broadcast %23 : vector<1x128xf32> to vector<16x128xf32>
      %25 = arith.addf %22, %24 : vector<16x128xf32>
      %c0_20 = arith.constant 0 : index
      %c0_21 = arith.constant 0 : index
      %26 = vector.load %arg7[%c0_20, %c0_21] : memref<16x128xf32, #tpu.memory_space<vmem>>, vector<16x128xf32>
      tpu.vector_store %arg7[%c0_20, %c0_21], %25 {strides = array<i32>} : memref<16x128xf32, #tpu.memory_space<vmem>>, vector<16x128xf32>,
      %c0_22 = arith.constant 0 : index
      %c0_23 = arith.constant 0 : index
      %27 = vector.load %arg10[%c0_22, %c0_23] : memref<16x1xf32, #tpu.memory_space<vmem>>, vector<16x1xf32>
      %cst_24 = arith.constant dense<0xFF800000> : vector<16xf32>
      %28 = vector.multi_reduction <maximumf>, %25, %cst_24 [1] : vector<16x128xf32> to vector<16xf32>
      %29 = vector.shape_cast %28 : vector<16xf32> to vector<16x1xf32>
      %30 = arith.maximumf %27, %29 : vector<16x1xf32>
      %31 = arith.subf %27, %30 : vector<16x1xf32>
      %32 = math.exp %31 : vector<16x1xf32>
      %c0_25 = arith.constant 0 : index
      %c0_26 = arith.constant 0 : index
      %33 = vector.load %arg11[%c0_25, %c0_26] : memref<16x1xf32, #tpu.memory_space<vmem>>, vector<16x1xf32>
      %34 = arith.mulf %32, %33 : vector<16x1xf32>
      %35 = vector.broadcast %30 : vector<16x1xf32> to vector<16x128xf32>
      %36 = arith.subf %25, %35 : vector<16x128xf32>
      %37 = math.exp %36 : vector<16x128xf32>
      %cst_27 = arith.constant dense<0.000000e+00> : vector<16xf32>
      %38 = vector.multi_reduction <add>, %37, %cst_27 [1] : vector<16x128xf32> to vector<16xf32>
      %39 = vector.shape_cast %38 : vector<16xf32> to vector<16x1xf32>
      %40 = arith.addf %34, %39 : vector<16x1xf32>
      %c0_28 = arith.constant 0 : index
      %c0_29 = arith.constant 0 : index
      %41 = vector.load %arg11[%c0_28, %c0_29] : memref<16x1xf32, #tpu.memory_space<vmem>>, vector<16x1xf32>
      tpu.vector_store %arg11[%c0_28, %c0_29], %40 {strides = array<i32>} : memref<16x1xf32, #tpu.memory_space<vmem>>, vector<16x1xf32>,
      %c0_30 = arith.constant 0 : index
      %c0_31 = arith.constant 0 : index
      %42 = vector.load %arg10[%c0_30, %c0_31] : memref<16x1xf32, #tpu.memory_space<vmem>>, vector<16x1xf32>
      tpu.vector_store %arg10[%c0_30, %c0_31], %30 {strides = array<i32>} : memref<16x1xf32, #tpu.memory_space<vmem>>, vector<16x1xf32>,
      %c128_i32 = arith.constant 128 : i32
      %43 = arith.muli %arg1, %c128_i32 : i32
      %44 = tpu.iota {dimensions = array<i32: 1>} : vector<16x128xi32>
      %45 = vector.broadcast %43 : i32 to vector<16x128xi32>
      %46 = arith.addi %45, %44 : vector<16x128xi32>
      %c0_32 = arith.constant 0 : index
      %c0_33 = arith.constant 0 : index
      %47 = vector.load %arg6[%c0_32, %c0_33] : memref<16x128xi32, #tpu.memory_space<vmem>>, vector<16x128xi32>
      %48 = vector.extract_strided_slice %47 {offsets = [0, 0], sizes = [16, 1], strides = [1, 1]} : vector<16x128xi32> to vector<16x1xi32>
      %49 = vector.broadcast %48 : vector<16x1xi32> to vector<16x128xi32>
      %50 = arith.cmpi eq, %46, %49 : vector<16x128xi32>
      %51 = arith.extui %50 : vector<16x128xi1> to vector<16x128xi32>
      %52 = arith.sitofp %51 : vector<16x128xi32> to vector<16x128xf32>
      %c0_34 = arith.constant 0 : index
      %c0_35 = arith.constant 0 : index
      %53 = vector.load %arg12[%c0_34, %c0_35] : memref<16x1xf32, #tpu.memory_space<vmem>>, vector<16x1xf32>
      %54 = arith.mulf %52, %25 : vector<16x128xf32>
      %cst_36 = arith.constant dense<0.000000e+00> : vector<16xf32>
      %55 = vector.multi_reduction <add>, %54, %cst_36 [1] : vector<16x128xf32> to vector<16xf32>
      %56 = vector.shape_cast %55 : vector<16xf32> to vector<16x1xf32>
      %57 = arith.addf %53, %56 : vector<16x1xf32>
      %c0_37 = arith.constant 0 : index
      %c0_38 = arith.constant 0 : index
      %58 = vector.load %arg12[%c0_37, %c0_38] : memref<16x1xf32, #tpu.memory_space<vmem>>, vector<16x1xf32>
      tpu.vector_store %arg12[%c0_37, %c0_38], %57 {strides = array<i32>} : memref<16x1xf32, #tpu.memory_space<vmem>>, vector<16x1xf32>,
    } else {
    }
    %c0_i32_13 = arith.constant 0 : i32
    %17 = arith.cmpi eq, %arg1, %c0_i32_13 : i32
    %c0_i32_14 = arith.constant 0 : i32
    %18 = arith.cmpi eq, %arg2, %c0_i32_14 : i32
    %19 = arith.andi %17, %18 : i1
    %20 = arith.extui %19 : i1 to i32
    %c0_i32_15 = arith.constant 0 : i32
    %21 = arith.cmpi ne, %20, %c0_i32_15 : i32
    scf.if %21 {
      %c0_16 = arith.constant 0 : index
      %c0_17 = arith.constant 0 : index
      %22 = vector.load %arg10[%c0_16, %c0_17] : memref<16x1xf32, #tpu.memory_space<vmem>>, vector<16x1xf32>
      %c0_18 = arith.constant 0 : index
      %c0_19 = arith.constant 0 : index
      %23 = vector.load %arg11[%c0_18, %c0_19] : memref<16x1xf32, #tpu.memory_space<vmem>>, vector<16x1xf32>
      %24 = math.log %23 : vector<16x1xf32>
      %25 = arith.addf %22, %24 : vector<16x1xf32>
      %c0_20 = arith.constant 0 : index
      %c0_21 = arith.constant 0 : index
      %26 = vector.load %arg12[%c0_20, %c0_21] : memref<16x1xf32, #tpu.memory_space<vmem>>, vector<16x1xf32>
      %27 = arith.subf %25, %26 : vector<16x1xf32>
      %c16_i32 = arith.constant 16 : i32
      %28 = arith.muli %arg0, %c16_i32 : i32
      %29 = tpu.iota {dimensions = array<i32: 0>} : vector<16x1xi32>
      %30 = vector.broadcast %28 : i32 to vector<16x1xi32>
      %31 = arith.addi %30, %29 : vector<16x1xi32>
      %c8_i32 = arith.constant 8 : i32
      %32 = vector.broadcast %c8_i32 : i32 to vector<16x1xi32>
      %33 = arith.cmpi slt, %31, %32 : vector<16x1xi32>
      %34 = arith.extui %33 : vector<16x1xi1> to vector<16x1xi32>
      %35 = arith.sitofp %34 : vector<16x1xi32> to vector<16x1xf32>
      %36 = arith.mulf %27, %35 : vector<16x1xf32>
      %37 = vector.shape_cast %36 : vector<16x1xf32> to vector<1x16x1xf32>
      %cst_22 = arith.constant dense<0.000000e+00> : vector<1xf32>
      %38 = vector.multi_reduction <add>, %37, %cst_22 [1, 2] : vector<1x16x1xf32> to vector<1xf32>
      %39 = vector.shape_cast %38 : vector<1xf32> to vector<1x1x1xf32>
      %40 = vector.extract %39[0, 0, 0] : f32 from vector<1x1x1xf32>
      %41 = vector.broadcast %40 : f32 to vector<1x1xf32>
      %42 = tpu.iota {dimensions = array<i32: 0>} : vector<8x128xi32>
      %43 = tpu.iota {dimensions = array<i32: 1>} : vector<8x128xi32>
      %c0_i32_23 = arith.constant 0 : i32
      %44 = vector.broadcast %c0_i32_23 : i32 to vector<8x128xi32>
      %45 = arith.cmpi eq, %42, %44 : vector<8x128xi32>
      %c0_i32_24 = arith.constant 0 : i32
      %46 = vector.broadcast %c0_i32_24 : i32 to vector<8x128xi32>
      %47 = arith.cmpi eq, %43, %46 : vector<8x128xi32>
      %48 = arith.andi %45, %47 : vector<8x128xi1>
      %cst_25 = arith.constant 0.000000e+00 : f32
      %49 = vector.broadcast %cst_25 : f32 to vector<8x128xf32>
      %50 = vector.shape_cast %41 : vector<1x1xf32> to vector<1x1xf32>
      %51 = vector.broadcast %50 : vector<1x1xf32> to vector<8x128xf32>
      %52 = arith.select %48, %51, %49 : vector<8x128xi1>, vector<8x128xf32>
      %c0_26 = arith.constant 0 : index
      %c0_27 = arith.constant 0 : index
      %53 = vector.load %arg8[%c0_26, %c0_27] : memref<8x128xf32, #tpu.memory_space<vmem>>, vector<8x128xf32>
      tpu.vector_store %arg8[%c0_26, %c0_27], %52 {strides = array<i32>} : memref<8x128xf32, #tpu.memory_space<vmem>>, vector<8x128xf32>,
    } else {
    }
    return
  }
  func.func @transform_0(%arg0: i32, %arg1: i32, %arg2: i32) -> (i32, i32) {
    %c0_i32 = arith.constant 0 : i32
    return %arg0, %arg2 : i32, i32
  }
  func.func @transform_1(%arg0: i32, %arg1: i32, %arg2: i32) -> (i32, i32) {
    %c0_i32 = arith.constant 0 : i32
    return %arg2, %arg1 : i32, i32
  }
  func.func @transform_2(%arg0: i32, %arg1: i32, %arg2: i32) -> (i32, i32) {
    %c0_i32 = arith.constant 0 : i32
    %c0_i32_0 = arith.constant 0 : i32
    return %c0_i32, %arg1 : i32, i32
  }
  func.func @transform_3(%arg0: i32, %arg1: i32, %arg2: i32) -> (i32, i32) {
    %c0_i32 = arith.constant 0 : i32
    %c0_i32_0 = arith.constant 0 : i32
    return %arg0, %c0_i32 : i32, i32
  }
  func.func @transform_4(%arg0: i32, %arg1: i32, %arg2: i32) -> (i32, i32) {
    %c0_i32 = arith.constant 0 : i32
    return %arg0, %arg1 : i32, i32
  }
  func.func @transform_5(%arg0: i32, %arg1: i32, %arg2: i32) -> (i32, i32) {
    %c0_i32 = arith.constant 0 : i32
    %c0_i32_0 = arith.constant 0 : i32
    return %arg0, %c0_i32 : i32, i32
  }
}

</mosaic_0001>

<bundles_post_ra>
// kernel: tpu_custom_call.1
= control target key start
LH: loop header
LB: loop body
LE: loop exit
PB: predicated region body
PF: predicated region fallthrough
CT: control target
= control target key end

     0   :  { %11 = vsyncpa [#allocation7], 0  ;;  %s666_s0 = inlined_call_operand.hbm [shape: bf16[16,128], index: 0, kind: input, shape index: {}]   ;;  %s667_s1 = inlined_call_operand.hbm [shape: bf16[128,128], index: 1, kind: input, shape index: {}]   ;;  %s668_s2 = inlined_call_operand.vmem [shape: f32[1,128], index: 2, kind: input, shape index: {}]   ;;  %s669_s3 = inlined_call_operand.hbm [shape: s32[16,128], index: 3, kind: input, shape index: {}]   ;;  %s670_s4 = inlined_call_operand.hbm [shape: f32[16,128], index: 4, kind: output, shape index: {0}]   ;;  %s671_s5 = inlined_call_operand.hbm [shape: f32[8,128], index: 5, kind: output, shape index: {1}]  }
   0x1   :  { %12 = vsyncpa [#allocation10], 0 }
   0x2   :  { %13 = vsyncpa [#allocation8], 0 }
   0x3   :  { %14 = vsyncpa [#allocation14], 0  ;;  %s563_s18 = smov [#allocation9]   ;;  %s564_s20 = smov [#allocation6]  }
   0x4   :  { %s32_s19 = sshll.u32 %s563_s18, 4  ;;  %s20_s21 = sshll.u32 %s564_s20, 4  ;;  %s33_s19 = int_to_ptr.vmem [resolvable:$true] %s32_s19  ;;  %s21_s21 = int_to_ptr.vmem [resolvable:$true] %s20_s21 }
   0x5   :  { %s463_s22 = scalar_lea.vmem %s33_s19, 1024  ;;  %p468_p1 = scmp.lt.s32.totalorder %s33_s19, %s33_s19 }
   0x6   :  { %p464_p0 = scmp.ne.s32.totalorder %s33_s19, %s463_s22  ;;  %p469_p2 = scmp.lt.s32.totalorder %s463_s22, %s463_s22 }
   0x8   :  { %p470_p3 = por %p469_p2, %p468_p1 }
   0xa   :  { %p471_p4 = pnand %p470_p3, %p464_p0 }
   0xc   :  { %474 = shalt.err (!%p471_p4)
}
   0xd   :  { %s565_s23 = smov 64   ;;  %s566_s24 = smov 4  }
   0xe   :  { %38 = dma.hbm_to_vmem [thread:$0]  %s667_s1, 1024, %s33_s19, [#allocation10], %s565_s23, %s565_s23, %s566_s24  }
   0xf   :  { %s483_s27 = scalar_lea.vmem %s21_s21, 128  ;;  %p488_p6 = scmp.lt.s32.totalorder %s21_s21, %s21_s21 }
  0x10   :  { %p484_p5 = scmp.ne.s32.totalorder %s21_s21, %s483_s27  ;;  %p489_p7 = scmp.lt.s32.totalorder %s483_s27, %s483_s27 }
  0x12   :  { %p490_p8 = por %p489_p7, %p488_p6 }
  0x14   :  { %p491_p9 = pnand %p490_p8, %p484_p5 }
  0x16   :  { %494 = shalt.err (!%p491_p9)
}
  0x17   :  { %26 = dma.hbm_to_vmem [thread:$0]  %s666_s0, 128, %s21_s21, [#allocation7], %s565_s23, %s565_s23, %s566_s24  }
  0x18   :  { %s567_s30 = smov [#allocation11]  }
  0x19   :  { %s46_s6 = sshll.u32 %s567_s30, 4  ;;  %s47_s6 = int_to_ptr.vmem [resolvable:$true] %s46_s6 }
  0x1a   :  { %s503_s7 = scalar_lea.vmem %s47_s6, 256  ;;  %p508_p11 = scmp.lt.s32.totalorder %s47_s6, %s47_s6 }
  0x1b   :  { %p504_p10 = scmp.ne.s32.totalorder %s47_s6, %s503_s7  ;;  %p509_p12 = scmp.lt.s32.totalorder %s503_s7, %s503_s7 }
  0x1d   :  { %p510_p13 = por %p509_p12, %p508_p11 }
  0x1f   :  { %p511_p0 = pnand %p510_p13, %p504_p10 }
  0x21   :  { %514 = shalt.err (!%p511_p0)
}
  0x22   :  { %s568_s1 = smov 128   ;;  %s569_s8 = smov 8  }
  0x23   :  { %52 = dma.hbm_to_vmem [thread:$0]  %s669_s3, 256, %s47_s6, [#allocation10], %s568_s1, %s568_s1, %s569_s8  }
  0x24   :  { %555 = dma.done.wait [#allocation7], 128  }
  0x25   :  { %556 = vsyncadd [#allocation7], 4294967168 }
  0x26   :  { %557 = dma.done.wait [#allocation10], 1280  }
  0x27   :  { %558 = vsyncadd [#allocation10], 4294966016  ;;  %v570_v0 = vmov 0.0   ;;  %vm571_vm0 = vmmov 0   ;;  %v434_v1 = vld [vmem:[#allocation9 + $0x38] sm:$0xff]   ;;  %v435_v2 = vld [vmem:[#allocation9 + $0x30] sm:$0xff]   ;;  %v262_v27 = vlaneseq }
  0x28   :  { %397 = vmatprep.subr.bf16.mxu0 %v570_v0  ;;  %413 = vmatprep.mubr.msk.bf16.mxu0 %vm571_vm0, %v570_v0  ;;  %v436_v3 = vld [vmem:[#allocation9 + $0x28] sm:$0xff]   ;;  %v437_v4 = vld [vmem:[#allocation9 + $0x20] sm:$0xff]   ;;  %v438_v5 = vld [vmem:[#allocation9 + $0x18] sm:$0xff]   ;;  %v572_v10 = vmov 0   ;;  %vm74_vm1 = vcmask 7168   ;;  %v573_v11 = vmov -inf  }
  0x29   :  { %398 = vmatpush3.bf16.msra.mxu0 %v434_v1  ;;  %v439_v6 = vld [vmem:[#allocation9 + $0x10] sm:$0xff]   ;;  %v440_v7 = vld [vmem:[#allocation9 + $0x8] sm:$0xff]   ;;  %v441_v8 = vld [vmem:[#allocation9] sm:$0xff]   ;;  %433 = vset.pattern.permute.xlu0 %v572_v10  ;;  %76 = vst.msk [vmem:[#allocation3 + $0x8] sm:$0xff] %vm74_vm1, %v573_v11  ;;  %v643_v30 = vand.u32 127, %v262_v27 }
  0x2a   :  { %399 = vmatprep.subr.bf16.mxu0 %v570_v0  ;;  %v442_v9 = vld [vmem:[#allocation6] sm:$0xff]   ;;  %432 = vset.pattern.permute.xlu1 %v572_v10  ;;  %75 = vst.msk [vmem:[#allocation3] sm:$0xff] %vm74_vm1, %v573_v11  ;;  %77 = vst.msk [vmem:[#allocation4] sm:$0xff] %vm74_vm1, %v570_v0  ;;  %v385_v12 = vld [vmem:[%s668_s2] ss:$0 sm:$0xff]  ;;  %s574_s2 = smov [#allocation12]  }
  0x2b   :  { %78 = vst.msk [vmem:[#allocation4 + $0x8] sm:$0xff] %vm74_vm1, %v570_v0  ;;  %79 = vst.msk [vmem:[#allocation5] sm:$0xff] %vm74_vm1, %v570_v0  ;;  %v267_v19 = vld [vmem:[#allocation11 + $0x8] sm:$0xff]  ;;  %v266_v29 = vld [vmem:[#allocation11] sm:$0xff]  ;;  %s349_s11 = sshll.u32 %s574_s2, 4  ;;  %s350_s11 = int_to_ptr.vmem [resolvable:$true] %s349_s11 }
  0x2c   :  { %80 = vst.msk [vmem:[#allocation5 + $0x8] sm:$0xff] %vm74_vm1, %v570_v0  ;;  %s515_s12 = scalar_lea.vmem %s350_s11, 256  ;;  %p520_p2 = scmp.lt.s32.totalorder %s350_s11, %s350_s11 }
  0x2d   :  { %400 = vmatpush3.bf16.msra.mxu0 %v435_v2  ;;  %p516_p1 = scmp.ne.s32.totalorder %s350_s11, %s515_s12  ;;  %p521_p3 = scmp.lt.s32.totalorder %s515_s12, %s515_s12 }
  0x2e   :  { %401 = vmatprep.subr.bf16.mxu0 %v570_v0 }
  0x2f   :  { %p522_p4 = por %p521_p3, %p520_p2 }
  0x30   :  { %v217_v20 = vld [vmem:[#allocation3 + $0x8] sm:$0xff] }
  0x31   :  { %402 = vmatpush3.bf16.msra.mxu0 %v436_v3  ;;  %v216_v23 = vld [vmem:[#allocation3] sm:$0xff]  ;;  %v230_v55 = vld [vmem:[#allocation4] sm:$0xff]  ;;  %p523_p5 = pnand %p522_p4, %p516_p1 }
  0x32   :  { %403 = vmatprep.subr.bf16.mxu0 %v570_v0  ;;  %v231_v51 = vld [vmem:[#allocation4 + $0x8] sm:$0xff]  ;;  %v280_v60 = vld [vmem:[#allocation5] sm:$0xff] }
  0x33   :  { %v281_v45 = vld [vmem:[#allocation5 + $0x8] sm:$0xff] }
  0x35   :  { %404 = vmatpush3.bf16.msra.mxu0 %v437_v4 }
  0x36   :  { %405 = vmatprep.subr.bf16.mxu0 %v570_v0 }
  0x39   :  { %406 = vmatpush3.bf16.msra.mxu0 %v438_v5 }
  0x3a   :  { %407 = vmatprep.subr.bf16.mxu0 %v570_v0 }
  0x3d   :  { %408 = vmatpush3.bf16.msra.mxu0 %v439_v6 }
  0x3e   :  { %409 = vmatprep.subr.bf16.mxu0 %v570_v0 }
  0x41   :  { %410 = vmatpush3.bf16.msra.mxu0 %v440_v7 }
  0x42   :  { %411 = vmatprep.subr.bf16.mxu0 %v570_v0 }
  0x45   :  { %412 = vmatpush3.bf16.msra.mxu0 %v441_v8 }
  0x48   :  { %414 = vmatmul.mubr.bf16.vlgmr.msra.gmra.mxu0 %v442_v9 }
 0x108   :  { %v189_v13 = vpop.f32.mrf.mxu0 }
 0x109   :  { %v212_v14 = vadd.f32 %v385_v12, %v189_v13 }
 0x10a   :  { %v415_v15 = vpop.f32.mrf.mxu0 }
 0x10b   :  { %214 = vst [vmem:[#allocation12] sm:$0xff] %v212_v14 }
 0x10c   :  { %v192_v16 = vpop.f32.mrf.mxu0 }
 0x10d   :  { %v213_v17 = vadd.f32 %v385_v12, %v192_v16 }
 0x10e   :  { %v416_v18 = vpop.f32.mrf.mxu0 }
 0x10f   :  { %215 = vst [vmem:[#allocation12 + $0x8] sm:$0xff] %v213_v17  ;;  %220 = vmax.xlane.f32.xlu0 %v213_v17 }
 0x113   :  { %218 = vmax.xlane.f32.xlu0 %v212_v14 }
 0x129   :  { %272 = vperm.xlu0 %433, %v267_v19  }
 0x198   :  { %v221_v21 = vpop.xlane.xlu0 %220 }
 0x199   :  { %v223_v22 = vmax.f32 %v217_v20, %v221_v21 }
 0x19b   :  { %v225_v24 = vsub.f32 %v217_v20, %v223_v22  ;;  %260 = vst.msk [vmem:[#allocation3 + $0x8] sm:$0xff] %vm74_vm1, %v223_v22  ;;  %241 = vperm.xlu1 %432, %v223_v22  }
 0x19c   :  { %v219_v25 = vpop.xlane.xlu0 %218 }
 0x19d   :  { %v222_v26 = vmax.f32 %v216_v23, %v219_v25  ;;  %v228_v48 = vmul.f32 1.442695, %v225_v24 }
 0x19f   :  { %v224_v28 = vsub.f32 %v216_v23, %v222_v26  ;;  %259 = vst.msk [vmem:[#allocation3] sm:$0xff] %vm74_vm1, %v222_v26  ;;  %236 = vperm.xlu1 %432, %v222_v26  }
 0x1a1   :  { %v226_v49 = vmul.f32 1.442695, %v224_v28 }
 0x1a2   :  { %v295_v3 = vld [vmem:[#allocation3 + $0x8] sm:$0xff] }
 0x1a3   :  { %269 = vperm.xlu1 %432, %v266_v29  }
 0x1a4   :  { %v273_v31 = vpop.permute.xlu0 %272 }
 0x1a5   :  { %vm275_vm2 = vcmp.eq.s32.totalorder %v643_v30, %v273_v31 }
 0x1a6   :  { %v387_v32 = vsel %vm275_vm2, 1.0, %v570_v0  ;;  %v294_v9 = vld [vmem:[#allocation3] sm:$0xff] }
 0x1a7   :  { %v283_v33 = vmul.f32 %v387_v32, %v213_v17 }
 0x1a9   :  { %286 = vadd.xlane.f32.xlu0 %v283_v33 }
 0x216   :  { %v242_v34 = vpop.permute.xlu1 %241 }
 0x217   :  { %v245_v35 = vsub.f32 %v213_v17, %v242_v34 }
 0x219   :  { %v248_v36 = vmul.f32 1.442695, %v245_v35 }
 0x21a   :  { %v237_v37 = vpop.permute.xlu1 %236 }
 0x21b   :  { %443 = vpow2.f32 %v248_v36  ;;  %v244_v38 = vsub.f32 %v212_v14, %v237_v37 }
 0x21d   :  { %v246_v39 = vmul.f32 1.442695, %v244_v38 }
 0x21e   :  { %v270_v40 = vpop.permute.xlu1 %269 }
 0x21f   :  { %445 = vpow2.f32 %v246_v39  ;;  %vm274_vm3 = vcmp.eq.s32.totalorder %v643_v30, %v270_v40 }
 0x220   :  { %v386_v43 = vsel %vm274_vm3, 1.0, %v570_v0  ;;  %447 = vpow2.f32 %v228_v48 }
 0x221   :  { %v282_v44 = vmul.f32 %v386_v43, %v212_v14  ;;  %449 = vpow2.f32 %v226_v49 }
 0x228   :  { %v444_v41 = vpop.eup %443 }
 0x229   :  { %252 = vadd.xlane.f32.xlu1 %v444_v41 }
 0x22c   :  { %v446_v42 = vpop.eup %445 }
 0x22d   :  { %250 = vadd.xlane.f32.xlu1 %v446_v42  ;;  %v448_v50 = vpop.eup %447 }
 0x22e   :  { %v233_v52 = vmul.f32 %v448_v50, %v231_v51  ;;  %v450_v53 = vpop.eup %449 }
 0x22f   :  { %v232_v57 = vmul.f32 %v450_v53, %v230_v55 }
 0x231   :  { %284 = vadd.xlane.f32.xlu1 %v282_v44 }
 0x232   :  { %v287_v46 = vpop.xlane.xlu0 %286 }
 0x233   :  { %v289_v47 = vadd.f32 %v287_v46, %v281_v45 }
 0x235   :  { %291 = vst.msk [vmem:[#allocation5 + $0x8] sm:$0xff] %vm74_vm1, %v289_v47 }
 0x23c   :  { %v305_v6 = vld [vmem:[#allocation5 + $0x8] sm:$0xff] }
 0x2b2   :  { %v253_v54 = vpop.xlane.xlu1 %252 }
 0x2b3   :  { %v255_v56 = vadd.f32 %v253_v54, %v233_v52 }
 0x2b5   :  { %258 = vst.msk [vmem:[#allocation4 + $0x8] sm:$0xff] %vm74_vm1, %v255_v56 }
 0x2b6   :  { %v251_v58 = vpop.xlane.xlu1 %250 }
 0x2b7   :  { %v254_v59 = vadd.f32 %v251_v58, %v232_v57 }
 0x2b9   :  { %257 = vst.msk [vmem:[#allocation4] sm:$0xff] %vm74_vm1, %v254_v59 }
 0x2ba   :  { %v285_v61 = vpop.xlane.xlu1 %284 }
 0x2bb   :  { %v288_v62 = vadd.f32 %v285_v61, %v280_v60 }
 0x2bc   :  { %v297_v63 = vld [vmem:[#allocation4 + $0x8] sm:$0xff] }
 0x2bd   :  { %290 = vst.msk [vmem:[#allocation5] sm:$0xff] %vm74_vm1, %v288_v62  ;;  %451 = vlog2.f32 %v297_v63 }
 0x2c0   :  { %v296_v0 = vld [vmem:[#allocation4] sm:$0xff] }
 0x2c1   :  { %453 = vlog2.f32 %v296_v0 }
 0x2c4   :  { %v304_v12 = vld [vmem:[#allocation5] sm:$0xff] }
 0x2ca   :  { %v452_v1 = vpop.eup %451 }
 0x2cb   :  { %v301_v2 = vmul.f32 0.6931472, %v452_v1 }
 0x2cd   :  { %v303_v4 = vadd.f32 %v301_v2, %v295_v3 }
 0x2ce   :  { %v454_v5 = vpop.eup %453 }
 0x2cf   :  { %v299_v7 = vmul.f32 0.6931472, %v454_v5  ;;  %v307_v8 = vsub.f32 %v303_v4, %v305_v6 }
 0x2d1   :  { %v302_v10 = vadd.f32 %v299_v7, %v294_v9  ;;  %v322_v11 = vmul.f32 0.0, %v307_v8 }
 0x2d3   :  { %v306_v13 = vsub.f32 %v302_v10, %v304_v12  ;;  %v325_v15 = vsel %vm74_vm1, %v322_v11, 0.0 }
 0x2d5   :  { %v324_v14 = vsel %vm74_vm1, %v306_v13, 0.0 }
 0x2d6   :  { %v326_v16 = vadd.f32 %v325_v15, %v324_v14 }
 0x2d8   :  { %327 = vadd.xlane.f32.xlu1 %v326_v16 }
 0x2d9   :  { %526 = shalt.err (!%p523_p5)
}
 0x2da   :  { %355 = dma.vmem_to_hbm [thread:$0]  %s350_s11, 256, %s670_s4, [#allocation8], %s568_s1, %s568_s1, %s569_s8   ;;  %v310_v24 = vshrl.u32 %v262_v27, 7  ;;  %vm339_vm5 = vcmp.eq.s32.totalorder %v643_v30, 0 }
 0x2db   :  { %s575_s15 = smov [#allocation13]  }
 0x2dc   :  { %vm338_vm4 = vcmp.eq.s32.totalorder %v310_v24, 0  ;;  %s362_s16 = sshll.u32 %s575_s15, 4  ;;  %s363_s16 = int_to_ptr.vmem [resolvable:$true] %s362_s16 }
 0x2dd   :  { %vm340_vm6 = vmand %vm338_vm4, %vm339_vm5  ;;  %s535_s4 = scalar_lea.vmem %s363_s16, 128  ;;  %p540_p7 = scmp.lt.s32.totalorder %s363_s16, %s363_s16 }
 0x2de   :  { %p536_p6 = scmp.ne.s32.totalorder %s363_s16, %s535_s4  ;;  %p541_p8 = scmp.lt.s32.totalorder %s535_s4, %s535_s4 }
 0x2e0   :  { %p542_p9 = por %p541_p8, %p540_p7 }
 0x2e2   :  { %p543_p10 = pnand %p542_p9, %p536_p6 }
 0x361   :  { %v328_v17 = vpop.xlane.xlu1 %327 }
 0x362   :  { %v329_v18 = vrot.slane %v328_v17, 4 }
 0x364   :  { %v330_v19 = vadd.f32 %v329_v18, %v328_v17 }
 0x366   :  { %v331_v20 = vrot.slane %v330_v19, 2 }
 0x368   :  { %v332_v21 = vadd.f32 %v331_v20, %v330_v19 }
 0x36a   :  { %v333_v22 = vrot.slane %v332_v21, 1 }
 0x36c   :  { %v334_v23 = vadd.f32 %v333_v22, %v332_v21 }
 0x36e   :  { %417 = vpush %v334_v23 }
 0x39f   :  { %s418_s17 = spop %417 }
 0x3a0   :  { %v341_v25 = vstv %s418_s17 }
 0x3a1   :  { %v342_v26 = vsel %vm340_vm6, %v341_v25, 0.0 }
 0x3a2   :  { %343 = vst [vmem:[#allocation13] sm:$0xff] %v342_v26 }
 0x3a3   :  { %546 = shalt.err (!%p543_p10)
}
 0x3a4   :  { %365 = dma.vmem_to_hbm [thread:$0]  %s363_s16, 128, %s671_s5, [#allocation14]  }
 0x3a5   :  { %559 = dma.done.wait [#allocation8], 256  }
 0x3a6   :  { %560 = vsyncadd [#allocation8], 4294967040 }
 0x3a7   :  { %561 = dma.done.wait [#allocation14], 128  }
 0x3a8   :  { %562 = vsyncadd [#allocation14], 4294967168 }
 0x3a9   :  { %372 = vsyncpa [#allocation7], 1 }
 0x3aa   :  { %373 = vsyncpa [#allocation10], 1 }
 0x3ab   :  { %374 = vsyncpa [#allocation8], 1 }
 0x3ac   :  { %375 = vsyncpa [#allocation14], 1 }

</bundles_post_ra>
